<compile_context>
chip_gen: v7x
topology: tpu7x:2x2x1
jax: 0.10.0
libtpu: 0.0.40
codegen_flags: <defaults>
</compile_context>

<pallas_src>
import functools

import jax
import jax.numpy as jnp
from jax.experimental import pallas as pl
from jax.experimental.pallas import tpu as pltpu


def _smooth_ce_kernel(pred_ref, gt_ref, out_ref, acc_ref, *,
                      coef_gt, coef_off, n_valid, tile_rows):
    i = pl.program_id(0)

    @pl.when(i == 0)
    def _():
        acc_ref[...] = jnp.zeros_like(acc_ref)

    pred = pred_ref[...].astype(jnp.float32)                 # (TR, C)
    tr, c = pred.shape
    gt = gt_ref[...]                                          # (TR, 1) int32

    # Numerically stable log-softmax pieces (no full log_prb / smoothed tensors).
    m = jnp.max(pred, axis=1, keepdims=True)                  # (TR, 1)
    shifted = pred - m                                        # (TR, C)
    lse = jnp.log(jnp.sum(jnp.exp(shifted), axis=1, keepdims=True))   # (TR, 1)

    # Gather shifted[row, gt[row]] via a one-hot compare + row reduction (VPU/XLU).
    class_ids = jax.lax.broadcasted_iota(jnp.int32, (tr, c), 1)
    shifted_gt = jnp.sum(jnp.where(class_ids == gt, shifted, 0.0),
                         axis=1, keepdims=True)               # (TR, 1)

    # per-row loss = lse - coef_gt * shifted_gt - coef_off * sum(shifted)
    row_loss = lse - coef_gt * shifted_gt
    if coef_off != 0.0:                                       # trace-time constant
        sum_shift = jnp.sum(shifted, axis=1, keepdims=True)   # (TR, 1)
        row_loss = row_loss - coef_off * sum_shift

    # Mask out padded rows (global row index >= N).
    row_ids = i * tile_rows + jax.lax.broadcasted_iota(jnp.int32, (tr, 1), 0)
    row_loss = jnp.where(row_ids < n_valid, row_loss, 0.0)

    acc_ref[...] += jnp.sum(row_loss)

    @pl.when(i == pl.num_programs(0) - 1)
    def _():
        out_ref[...] = acc_ref[...] / float(n_valid)


def smooth_cross_entropy(pred, gt, smoothing=True, eps=0.2,
                         tile_rows=None, target_tile_bytes=8 << 20):
    """Equivalent of SmoothCrossEntropy.forward(pred, gt).

    pred: [N, C] float array of logits (f32 or bf16).
    gt:   [N] int array of class indices.
    """
    n, c = pred.shape
    eff_eps = float(eps) if smoothing else 0.0
    coef_off = (eff_eps / (c - 1)) if c > 1 else 0.0
    coef_gt = (1.0 - eff_eps) - coef_off

    itemsize = jnp.dtype(pred.dtype).itemsize

    # Choose a large row tile (~target_tile_bytes of pred per block), multiple of 8.
    if tile_rows is None:
        rows = target_tile_bytes // max(1, c * itemsize)
        rows = int(max(8, min(4096, rows)))
        tile_rows = max(8, (rows // 8) * 8)
    if tile_rows > n:
        tile_rows = max(8, ((n + 7) // 8) * 8)
    assert tile_rows % 8 == 0

    # Pad rows so N is a multiple of tile_rows; padded rows are masked in-kernel.
    n_pad = ((n + tile_rows - 1) // tile_rows) * tile_rows
    if n_pad != n:
        pred = jnp.pad(pred, ((0, n_pad - n), (0, 0)))
        gt = jnp.pad(gt, (0, n_pad - n))
    gt2 = gt.reshape(n_pad, 1).astype(jnp.int32)

    grid = (n_pad // tile_rows,)

    # VMEM budget: double-buffered pred tile + double-buffered gt tile
    # (int32 (TR,1) blocks pad to 128 lanes -> 512 B/row) + headroom.
    pred_tile_bytes = tile_rows * c * itemsize
    gt_tile_bytes = tile_rows * 512
    vmem_limit = 2 * pred_tile_bytes + 2 * gt_tile_bytes + (2 << 20)
    vmem_limit = int(min(max(vmem_limit, 16 << 20), 40 << 20))

    cost = pl.CostEstimate(
        flops=7 * n_pad * c,
        transcendentals=n_pad * c + n_pad,
        bytes_accessed=n_pad * c * itemsize + n_pad * 4 + 4,
    )

    kernel = functools.partial(
        _smooth_ce_kernel,
        coef_gt=coef_gt, coef_off=coef_off,
        n_valid=n, tile_rows=tile_rows,
    )

    out = pl.pallas_call(
        kernel,
        out_shape=jax.ShapeDtypeStruct((1, 1), jnp.float32),
        grid_spec=pltpu.PrefetchScalarGridSpec(
            num_scalar_prefetch=0,
            grid=grid,
            in_specs=[
                pl.BlockSpec((tile_rows, c), lambda i: (i, 0)),
                pl.BlockSpec((tile_rows, 1), lambda i: (i, 0)),
            ],
            out_specs=pl.BlockSpec((1, 1), lambda i: (0, 0)),
            scratch_shapes=[pltpu.VMEM((1, 1), jnp.float32)],
        ),
        compiler_params=pltpu.CompilerParams(
            dimension_semantics=("arbitrary",),
            vmem_limit_bytes=vmem_limit,
        ),
        cost_estimate=cost,
    )(pred, gt2)
    return out[0, 0]


def _reference(pred, gt, smoothing=True, eps=0.2):
    n, c = pred.shape
    one_hot = jax.nn.one_hot(gt, c, dtype=jnp.float32)
    if smoothing:
        one_hot = one_hot * (1 - eps) + (1 - one_hot) * eps / (c - 1)
    log_prb = jax.nn.log_softmax(pred.astype(jnp.float32), axis=1)
    return -(one_hot * log_prb).sum(axis=1).mean()


if __name__ == "__main__":
    key = jax.random.PRNGKey(0)
    k1, k2 = jax.random.split(key)

    N, C = 16, 32
    pred = jax.random.normal(k1, (N, C), dtype=jnp.float32)
    gt = jax.random.randint(k2, (N,), 0, C, dtype=jnp.int32)

    # Smoothed path.
    loss = jax.block_until_ready(
        smooth_cross_entropy(pred, gt, smoothing=True, eps=0.2))
    ref = _reference(pred, gt, smoothing=True, eps=0.2)
    assert jnp.allclose(loss, ref, atol=1e-5, rtol=1e-5), (loss, ref)

    # Plain cross-entropy path (smoothing=False).
    loss_ce = jax.block_until_ready(
        smooth_cross_entropy(pred, gt, smoothing=False))
    ref_ce = _reference(pred, gt, smoothing=False)
    assert jnp.allclose(loss_ce, ref_ce, atol=1e-5, rtol=1e-5), (loss_ce, ref_ce)

    # Non-multiple-of-tile N exercises padding + in-kernel row masking.
    N2 = 13
    pred2 = jax.random.normal(k1, (N2, C), dtype=jnp.float32)
    gt2 = jax.random.randint(k2, (N2,), 0, C, dtype=jnp.int32)
    loss2 = jax.block_until_ready(
        smooth_cross_entropy(pred2, gt2, smoothing=True, eps=0.2))
    ref2 = _reference(pred2, gt2, smoothing=True, eps=0.2)
    assert jnp.allclose(loss2, ref2, atol=1e-5, rtol=1e-5), (loss2, ref2)

    # Multi-tile path (forces grid > 1 with a small tile) to exercise the
    # accumulator init / finalize logic.
    N3 = 40
    pred3 = jax.random.normal(k1, (N3, C), dtype=jnp.float32)
    gt3 = jax.random.randint(k2, (N3,), 0, C, dtype=jnp.int32)
    loss3 = jax.block_until_ready(
        smooth_cross_entropy(pred3, gt3, smoothing=True, eps=0.2, tile_rows=16))
    ref3 = _reference(pred3, gt3, smoothing=True, eps=0.2)
    assert jnp.allclose(loss3, ref3, atol=1e-5, rtol=1e-5), (loss3, ref3)

    print("KERNEL_OK")
</pallas_src>

<mosaic_0001>
module attributes {stable_mosaic.version = 11 : i64} {
  func.func @_smooth_ce_kernel(%arg0: i32, %arg1: memref<16x32xf32, #tpu.memory_space<vmem>>, %arg2: memref<16x1xi32, #tpu.memory_space<vmem>>, %arg3: memref<1x1xf32, #tpu.memory_space<vmem>>, %arg4: memref<1x1xf32, #tpu.memory_space<vmem>>) attributes {dimension_semantics = [#tpu.dimension_semantics<arbitrary>], iteration_bounds = array<i64: 1>, scalar_prefetch = 0 : i64, scratch_operands = 1 : i64, tpu.core_type = #tpu.core_type<tc>, window_params = [{transform_indices = @transform_0, window_bounds = array<i64: 16, 32>}, {transform_indices = @transform_1, window_bounds = array<i64: 16, 1>}, {pipeline_mode = #tpu.pipeline_mode<synchronous>, transform_indices = @transform_2, window_bounds = array<i64: 1, 1>}]} {
    %c0_i32 = arith.constant 0 : i32
    %0 = arith.cmpi eq, %arg0, %c0_i32 : i32
    %1 = arith.extui %0 : i1 to i32
    %c0_i32_0 = arith.constant 0 : i32
    %2 = arith.cmpi ne, %1, %c0_i32_0 : i32
    scf.if %2 {
      %cst_19 = arith.constant 0.000000e+00 : f32
      %47 = vector.broadcast %cst_19 : f32 to vector<1x1xf32>
      %c0_20 = arith.constant 0 : index
      %c0_21 = arith.constant 0 : index
      %48 = vector.load %arg4[%c0_20, %c0_21] : memref<1x1xf32, #tpu.memory_space<vmem>>, vector<1x1xf32>
      tpu.vector_store %arg4[%c0_20, %c0_21], %47 {strides = array<i32>} : memref<1x1xf32, #tpu.memory_space<vmem>>, vector<1x1xf32>,
    } else {
    }
    %c0 = arith.constant 0 : index
    %c0_1 = arith.constant 0 : index
    %3 = vector.load %arg1[%c0, %c0_1] : memref<16x32xf32, #tpu.memory_space<vmem>>, vector<16x32xf32>
    %c0_2 = arith.constant 0 : index
    %c0_3 = arith.constant 0 : index
    %4 = vector.load %arg2[%c0_2, %c0_3] : memref<16x1xi32, #tpu.memory_space<vmem>>, vector<16x1xi32>
    %cst = arith.constant dense<0xFF800000> : vector<16xf32>
    %5 = vector.multi_reduction <maximumf>, %3, %cst [1] : vector<16x32xf32> to vector<16xf32>
    %6 = vector.shape_cast %5 : vector<16xf32> to vector<16x1xf32>
    %7 = vector.broadcast %6 : vector<16x1xf32> to vector<16x32xf32>
    %8 = arith.subf %3, %7 : vector<16x32xf32>
    %9 = math.exp %8 : vector<16x32xf32>
    %cst_4 = arith.constant dense<0.000000e+00> : vector<16xf32>
    %10 = vector.multi_reduction <add>, %9, %cst_4 [1] : vector<16x32xf32> to vector<16xf32>
    %11 = vector.shape_cast %10 : vector<16xf32> to vector<16x1xf32>
    %12 = math.log %11 : vector<16x1xf32>
    %13 = tpu.iota {dimensions = array<i32: 1>} : vector<16x32xi32>
    %14 = vector.broadcast %4 : vector<16x1xi32> to vector<16x32xi32>
    %15 = arith.cmpi eq, %13, %14 : vector<16x32xi32>
    %cst_5 = arith.constant 0.000000e+00 : f32
    %16 = vector.broadcast %cst_5 : f32 to vector<16x32xf32>
    %17 = arith.select %15, %8, %16 : vector<16x32xi1>, vector<16x32xf32>
    %cst_6 = arith.constant dense<0.000000e+00> : vector<16xf32>
    %18 = vector.multi_reduction <add>, %17, %cst_6 [1] : vector<16x32xf32> to vector<16xf32>
    %19 = vector.shape_cast %18 : vector<16xf32> to vector<16x1xf32>
    %cst_7 = arith.constant 0.793548405 : f32
    %20 = vector.broadcast %cst_7 : f32 to vector<16x1xf32>
    %21 = arith.mulf %20, %19 : vector<16x1xf32>
    %22 = arith.subf %12, %21 : vector<16x1xf32>
    %cst_8 = arith.constant dense<0.000000e+00> : vector<16xf32>
    %23 = vector.multi_reduction <add>, %8, %cst_8 [1] : vector<16x32xf32> to vector<16xf32>
    %24 = vector.shape_cast %23 : vector<16xf32> to vector<16x1xf32>
    %cst_9 = arith.constant 0.0064516128 : f32
    %25 = vector.broadcast %cst_9 : f32 to vector<16x1xf32>
    %26 = arith.mulf %25, %24 : vector<16x1xf32>
    %27 = arith.subf %22, %26 : vector<16x1xf32>
    %c16_i32 = arith.constant 16 : i32
    %28 = arith.muli %arg0, %c16_i32 : i32
    %29 = tpu.iota {dimensions = array<i32: 0>} : vector<16x1xi32>
    %30 = vector.broadcast %28 : i32 to vector<16x1xi32>
    %31 = arith.addi %30, %29 : vector<16x1xi32>
    %c16_i32_10 = arith.constant 16 : i32
    %32 = vector.broadcast %c16_i32_10 : i32 to vector<16x1xi32>
    %33 = arith.cmpi slt, %31, %32 : vector<16x1xi32>
    %cst_11 = arith.constant 0.000000e+00 : f32
    %34 = vector.broadcast %cst_11 : f32 to vector<16x1xf32>
    %35 = arith.select %33, %27, %34 : vector<16x1xi1>, vector<16x1xf32>
    %c0_12 = arith.constant 0 : index
    %c0_13 = arith.constant 0 : index
    %36 = vector.load %arg4[%c0_12, %c0_13] : memref<1x1xf32, #tpu.memory_space<vmem>>, vector<1x1xf32>
    %37 = vector.shape_cast %35 : vector<16x1xf32> to vector<1x16x1xf32>
    %cst_14 = arith.constant dense<0.000000e+00> : vector<1xf32>
    %38 = vector.multi_reduction <add>, %37, %cst_14 [1, 2] : vector<1x16x1xf32> to vector<1xf32>
    %39 = vector.shape_cast %38 : vector<1xf32> to vector<1x1x1xf32>
    %40 = vector.extract %39[0, 0, 0] : f32 from vector<1x1x1xf32>
    %41 = vector.broadcast %40 : f32 to vector<1x1xf32>
    %42 = arith.addf %36, %41 : vector<1x1xf32>
    %c0_15 = arith.constant 0 : index
    %c0_16 = arith.constant 0 : index
    %43 = vector.load %arg4[%c0_15, %c0_16] : memref<1x1xf32, #tpu.memory_space<vmem>>, vector<1x1xf32>
    tpu.vector_store %arg4[%c0_15, %c0_16], %42 {strides = array<i32>} : memref<1x1xf32, #tpu.memory_space<vmem>>, vector<1x1xf32>,
    %c0_i32_17 = arith.constant 0 : i32
    %44 = arith.cmpi eq, %arg0, %c0_i32_17 : i32
    %45 = arith.extui %44 : i1 to i32
    %c0_i32_18 = arith.constant 0 : i32
    %46 = arith.cmpi ne, %45, %c0_i32_18 : i32
    scf.if %46 {
      %c0_19 = arith.constant 0 : index
      %c0_20 = arith.constant 0 : index
      %47 = vector.load %arg4[%c0_19, %c0_20] : memref<1x1xf32, #tpu.memory_space<vmem>>, vector<1x1xf32>
      %cst_21 = arith.constant 1.600000e+01 : f32
      %48 = vector.broadcast %cst_21 : f32 to vector<1x1xf32>
      %49 = arith.divf %47, %48 : vector<1x1xf32>
      %c0_22 = arith.constant 0 : index
      %c0_23 = arith.constant 0 : index
      %50 = vector.load %arg3[%c0_22, %c0_23] : memref<1x1xf32, #tpu.memory_space<vmem>>, vector<1x1xf32>
      tpu.vector_store %arg3[%c0_22, %c0_23], %49 {strides = array<i32>} : memref<1x1xf32, #tpu.memory_space<vmem>>, vector<1x1xf32>,
    } else {
    }
    return
  }
  func.func @transform_0(%arg0: i32) -> (i32, i32) {
    %c0_i32 = arith.constant 0 : i32
    %c0_i32_0 = arith.constant 0 : i32
    return %arg0, %c0_i32 : i32, i32
  }
  func.func @transform_1(%arg0: i32) -> (i32, i32) {
    %c0_i32 = arith.constant 0 : i32
    %c0_i32_0 = arith.constant 0 : i32
    return %arg0, %c0_i32 : i32, i32
  }
  func.func @transform_2(%arg0: i32) -> (i32, i32) {
    %c0_i32 = arith.constant 0 : i32
    %c0_i32_0 = arith.constant 0 : i32
    %c0_i32_1 = arith.constant 0 : i32
    return %c0_i32, %c0_i32_0 : i32, i32
  }
}

</mosaic_0001>

<bundles_post_ra>
// kernel: tpu_custom_call.1
= control target key start
LH: loop header
LB: loop body
LE: loop exit
PB: predicated region body
PF: predicated region fallthrough
CT: control target
= control target key end

     0   :  { %vm22_vm0 = vcmask 261120   ;;  %v166_v4 = vmov 0   ;;  %s219_s0 = inlined_call_operand.vmem [shape: f32[16,32], index: 0, kind: input, shape index: {}]   ;;  %s220_s1 = inlined_call_operand.vmem [shape: s32[16,1], index: 1, kind: input, shape index: {}]   ;;  %s221_s2 = inlined_call_operand.hbm [shape: f32[1,1], index: 2, kind: output, shape index: {}]  }
   0x1   :  { %v18_v0 = vld [vmem:[%s219_s0] sm:$0xff]  ;;  %v19_v1 = vld [vmem:[%s219_s0 + $0x8] sm:$0xff]  ;;  %132 = vset.pattern.permute.xlu1 %v166_v4  ;;  %133 = vset.pattern.permute.xlu0 %v166_v4 }
   0x2   :  { %v20_v2 = vld [vmem:[%s220_s1] sm:$0xff]  ;;  %v23_v3 = vsel %vm22_vm0, %v18_v0, -inf }
   0x3   :  { %7 = vsyncpa [#allocation4], 0  ;;  %24 = vmax.xlane.f32.xlu0 %v23_v3  ;;  %48 = vperm.xlu1 %132, %v20_v2   ;;  %v26_v5 = vsel %vm22_vm0, %v19_v1, -inf  ;;  %v21_v6 = vld [vmem:[%s220_s1 + $0x8] sm:$0xff]  ;;  %v45_v12 = vlaneseq  ;;  %vm89_vm3 = vcmask 7168   ;;  %vm16_vm4 = vcmask 0  }
   0x4   :  { %v167_v48 = vmov 0.0   ;;  %s168_s1 = smov [#allocation3]  }
   0x5   :  { %v46_v15 = vand.u32 127, %v45_v12  ;;  %17 = vst.msk [vmem:[#allocation2] sm:$0x1] %vm16_vm4, %v167_v48  ;;  %s119_s17 = sshll.u32 %s168_s1, 4  ;;  %s120_s17 = int_to_ptr.vmem [resolvable:$true] %s119_s17 }
   0x6   :  { %s142_s18 = scalar_lea.vmem %s120_s17, 16  ;;  %s146_s19 = scalar_lea.vmem %s120_s17, 32 }
   0x7   :  { %27 = vmax.xlane.f32.xlu0 %v26_v5  ;;  %51 = vperm.xlu1 %132, %v21_v6   ;;  %p143_p0 = scmp.ne.s32.totalorder %s120_s17, %s142_s18  ;;  %p147_p1 = scmp.lt.s32.totalorder %s120_s17, %s120_s17 }
   0x8   :  { %p148_p2 = scmp.lt.s32.totalorder %s146_s19, %s142_s18 }
   0xa   :  { %p149_p3 = por %p148_p2, %p147_p1 }
   0xc   :  { %v88_v56 = vld [vmem:[#allocation2] sm:$0x1]  ;;  %p150_p4 = pnand %p149_p3, %p143_p0 }
  0x82   :  { %v49_v14 = vpop.permute.xlu1 %48 }
  0x83   :  { %vm53_vm1 = vcmp.eq.s32.totalorder %v46_v15, %v49_v14 }
  0x86   :  { %v52_v17 = vpop.permute.xlu1 %51 }
  0x87   :  { %vm54_vm2 = vcmp.eq.s32.totalorder %v46_v15, %v52_v17 }
  0x90   :  { %v25_v7 = vpop.xlane.xlu0 %24 }
  0x91   :  { %v29_v8 = vsub.f32 %v18_v0, %v25_v7 }
  0x93   :  { %v31_v9 = vmul.f32 1.442695, %v29_v8  ;;  %v55_v19 = vsel %vm53_vm1, %v29_v8, 0.0  ;;  %v67_v25 = vsel %vm22_vm0, %v29_v8, 0.0 }
  0x94   :  { %v28_v10 = vpop.xlane.xlu0 %27  ;;  %v57_v21 = vsel %vm22_vm0, %v55_v19, 0.0 }
  0x95   :  { %134 = vpow2.f32 %v31_v9  ;;  %v30_v11 = vsub.f32 %v19_v1, %v28_v10 }
  0x97   :  { %v33_v13 = vmul.f32 1.442695, %v30_v11  ;;  %v56_v23 = vsel %vm54_vm2, %v30_v11, 0.0  ;;  %v70_v26 = vsel %vm22_vm0, %v30_v11, 0.0 }
  0x98   :  { %v60_v24 = vsel %vm22_vm0, %v56_v23, 0.0 }
  0x99   :  { %136 = vpow2.f32 %v33_v13 }
  0x9f   :  { %v135_v16 = vpop.eup %134 }
  0xa0   :  { %v35_v18 = vsel %vm22_vm0, %v135_v16, 0.0 }
  0xa1   :  { %36 = vadd.xlane.f32.xlu0 %v35_v18 }
  0xa3   :  { %v137_v20 = vpop.eup %136 }
  0xa4   :  { %v38_v22 = vsel %vm22_vm0, %v137_v20, 0.0 }
  0xa5   :  { %58 = vadd.xlane.f32.xlu0 %v57_v21  ;;  %39 = vadd.xlane.f32.xlu1 %v38_v22 }
  0xa9   :  { %61 = vadd.xlane.f32.xlu0 %v60_v24 }
  0xad   :  { %68 = vadd.xlane.f32.xlu0 %v67_v25 }
  0xb1   :  { %71 = vadd.xlane.f32.xlu0 %v70_v26 }
 0x12e   :  { %v37_v27 = vpop.xlane.xlu0 %36 }
 0x12f   :  { %138 = vlog2.f32 %v37_v27 }
 0x132   :  { %v40_v28 = vpop.xlane.xlu1 %39  ;;  %v59_v29 = vpop.xlane.xlu0 %58 }
 0x133   :  { %140 = vlog2.f32 %v40_v28  ;;  %v63_v33 = vmul.f32 0.7935484, %v59_v29 }
 0x136   :  { %v62_v30 = vpop.xlane.xlu0 %61 }
 0x137   :  { %v64_v39 = vmul.f32 0.7935484, %v62_v30 }
 0x139   :  { %v139_v31 = vpop.eup %138 }
 0x13a   :  { %v42_v32 = vmul.f32 0.6931472, %v139_v31  ;;  %v69_v34 = vpop.xlane.xlu0 %68 }
 0x13b   :  { %v73_v36 = vmul.f32 0.006451613, %v69_v34 }
 0x13c   :  { %v65_v35 = vsub.f32 %v42_v32, %v63_v33 }
 0x13d   :  { %v141_v37 = vpop.eup %140 }
 0x13e   :  { %v44_v38 = vmul.f32 0.6931472, %v141_v37  ;;  %v72_v40 = vpop.xlane.xlu0 %71  ;;  %v75_v43 = vsub.f32 %v65_v35, %v73_v36 }
 0x13f   :  { %v74_v41 = vmul.f32 0.006451613, %v72_v40 }
 0x140   :  { %v66_v42 = vsub.f32 %v44_v38, %v64_v39  ;;  %v90_v45 = vsel %vm89_vm3, %v75_v43, 0.0 }
 0x142   :  { %v76_v44 = vsub.f32 %v66_v42, %v74_v41 }
 0x144   :  { %v91_v46 = vsel %vm89_vm3, %v76_v44, 0.0 }
 0x145   :  { %v92_v47 = vadd.f32 %v91_v46, %v90_v45 }
 0x147   :  { %93 = vadd.xlane.f32.xlu0 %v92_v47 }
 0x1d4   :  { %v94_v49 = vpop.xlane.xlu0 %93 }
 0x1d5   :  { %v95_v50 = vrot.slane %v94_v49, 4 }
 0x1d7   :  { %v96_v51 = vadd.f32 %v95_v50, %v94_v49 }
 0x1d9   :  { %v97_v52 = vrot.slane %v96_v51, 2 }
 0x1db   :  { %v98_v53 = vadd.f32 %v97_v52, %v96_v51 }
 0x1dd   :  { %v99_v54 = vrot.slane %v98_v53, 1 }
 0x1df   :  { %v100_v55 = vadd.f32 %v99_v54, %v98_v53 }
 0x1e1   :  { %127 = vpush %v100_v55 }
 0x212   :  { %s128_s0 = spop %127 }
 0x213   :  { %v102_v57 = vstv %s128_s0 }
 0x214   :  { %v103_v58 = vadd.f32 %v102_v57, %v88_v56 }
 0x216   :  { %105 = vst.msk [vmem:[#allocation2] sm:$0x1] %vm16_vm4, %v103_v58 }
 0x21d   :  { %v109_v59 = vld [vmem:[#allocation2] sm:$0x1] }
 0x21e   :  { %v111_v60 = vmul.f32 0.0625, %v109_v59 }
 0x220   :  { %112 = vst.msk [vmem:[#allocation3] sm:$0x1] %vm16_vm4, %v111_v60 }
 0x221   :  { %153 = shalt.err (!%p150_p4)
}
 0x222   :  { %s154_s22 = scalar_lea.hbm %s221_s2, 16 }
 0x223   :  { %p155_p5 = scmp.ne.s32.totalorder %s221_s2, %s154_s22  ;;  %p158_p6 = scmp.lt.u32.totalorder %s154_s22, %s221_s2 }
 0x225   :  { %p160_p7 = pnand %p158_p6, %p155_p5 }
 0x227   :  { %163 = shalt.err (!%p160_p7)
}
 0x228   :  { %122 = dma.vmem_to_hbm [thread:$0]  %s120_s17, 16, %s221_s2, [#allocation4]  }
 0x229   :  { %164 = dma.done.wait [#allocation4], 16  }
 0x22a   :  { %165 = vsyncadd [#allocation4], 4294967280 }
 0x22b   :  { %126 = vsyncpa [#allocation4], 1 }

</bundles_post_ra>
